<compile_context>
chip_gen: v7x
topology: tpu7x:2x2x1
jax: 0.10.0
libtpu: 0.0.40
codegen_flags: <defaults>
</compile_context>

<pallas_src>
import jax
import jax.numpy as jnp
from jax.experimental import pallas as pl
from jax.experimental.pallas import tpu as pltpu


def _round_up(x, m):
    return ((x + m - 1) // m) * m


def clip_classifier_kernel(img_ref, w_enc_ref, w_cls_ref, b_cls_ref, out_ref,
                           acc_ref):
    """grid = (batch_tiles, k_blocks); K (reduction) axis is last."""
    k = pl.program_id(1)

    # --- init accumulator on first K block ---
    @pl.when(k == 0)
    def _():
        acc_ref[...] = jnp.zeros_like(acc_ref)

    # --- frozen "encode_image": bf16 K-streamed GEMM, f32 accumulation ---
    acc_ref[...] += jnp.dot(
        img_ref[...], w_enc_ref[...], preferred_element_type=jnp.float32
    )

    # --- epilogue on last K block: half-precision features, classifier, bias ---
    @pl.when(k == pl.num_programs(1) - 1)
    def _():
        # CLIP encoders emit half-precision features; cast only AFTER the full
        # K accumulation so tiling does not change numerics.
        feats_half = acc_ref[...].astype(jnp.bfloat16)
        feats = feats_half.astype(jnp.float32)            # features.float()
        # Classifier stays f32 (nn.Linear default dtype); single tiny GEMM per
        # batch tile -> cost negligible, numerics match the reference.
        logits = jnp.dot(
            feats, w_cls_ref[...], preferred_element_type=jnp.float32
        ) + b_cls_ref[...]                                # bias added once per tile
        out_ref[...] = logits


def clip_classifier_forward(image_nchw, w_enc, w_cls, b_cls, *, tm=128, tk=512):
    """image_nchw: (B, C, H, W). Returns (B, num_classes) f32 logits."""
    B, C, H, W = image_nchw.shape
    d_in = C * H * W
    output_dim = w_enc.shape[1]
    num_classes = w_cls.shape[1]

    # ---- tile sizes / lane-dense padding (bf16 sublane=16, lane=128) ----
    tm = min(tm, _round_up(B, 16))            # batch tile, multiple of 16
    B_pad = _round_up(B, tm)
    tk = min(tk, _round_up(d_in, 128))        # K block, multiple of 128
    d_in_pad = _round_up(d_in, tk)
    od_pad = _round_up(output_dim, 128)       # lane-dense encoder output
    nc_pad = _round_up(num_classes, 128)      # lane-dense logits

    # ---- glue: flatten + zero-pad operands (zero padding is exact) ----
    img = image_nchw.reshape(B, d_in).astype(jnp.bfloat16)
    img = jnp.pad(img, ((0, B_pad - B), (0, d_in_pad - d_in)))
    w_enc_p = jnp.pad(
        w_enc.astype(jnp.bfloat16),
        ((0, d_in_pad - d_in), (0, od_pad - output_dim)),
    )
    w_cls_p = jnp.pad(
        w_cls.astype(jnp.float32),
        ((0, od_pad - output_dim), (0, nc_pad - num_classes)),
    )
    b_cls_p = jnp.pad(
        b_cls.astype(jnp.float32), (0, nc_pad - num_classes)
    ).reshape(1, nc_pad)

    grid = (B_pad // tm, d_in_pad // tk)

    # ---- VMEM budget: double-buffered streams + resident params + scratch ----
    est_bytes = (
        2 * (tm * tk * 2                   # img block (bf16), double buffered
             + tk * od_pad * 2)            # w_enc block (bf16), double buffered
        + od_pad * nc_pad * 4              # w_cls (f32), resident
        + nc_pad * 4                       # bias (f32), resident
        + 2 * tm * nc_pad * 4              # out block (f32)
        + tm * od_pad * 4                  # f32 accumulator scratch
    )
    vmem_limit = min(64 << 20, max(32 << 20, est_bytes + (4 << 20)))

    cost = pl.CostEstimate(
        flops=2 * B_pad * d_in_pad * od_pad + 2 * B_pad * od_pad * nc_pad,
        transcendentals=0,
        bytes_accessed=(B_pad * d_in_pad * 2                 # img
                        + d_in_pad * od_pad * 2 * grid[0]    # w_enc per batch tile
                        + od_pad * nc_pad * 4
                        + B_pad * nc_pad * 4),
    )

    out_padded = pl.pallas_call(
        clip_classifier_kernel,
        out_shape=jax.ShapeDtypeStruct((B_pad, nc_pad), jnp.float32),
        grid_spec=pltpu.PrefetchScalarGridSpec(
            num_scalar_prefetch=0,
            grid=grid,
            in_specs=[
                pl.BlockSpec((tm, tk), lambda i, k: (i, k)),          # img
                pl.BlockSpec((tk, od_pad), lambda i, k: (k, 0)),      # w_enc
                pl.BlockSpec((od_pad, nc_pad), lambda i, k: (0, 0)),  # w_cls
                pl.BlockSpec((1, nc_pad), lambda i, k: (0, 0)),       # bias
            ],
            out_specs=pl.BlockSpec((tm, nc_pad), lambda i, k: (i, 0)),
            scratch_shapes=[pltpu.VMEM((tm, od_pad), jnp.float32)],
        ),
        compiler_params=pltpu.CompilerParams(
            dimension_semantics=("parallel", "arbitrary"),
            vmem_limit_bytes=vmem_limit,
        ),
        cost_estimate=cost,
    )(img, w_enc_p, w_cls_p, b_cls_p)

    # Strip batch / lane padding.
    return out_padded[:B, :num_classes]


def reference_forward(image_nchw, w_enc, w_cls, b_cls):
    """Pure-JAX reference mirroring the PyTorch forward."""
    B = image_nchw.shape[0]
    img_flat = image_nchw.reshape(B, -1).astype(jnp.bfloat16)
    feats = jnp.dot(
        img_flat, w_enc, preferred_element_type=jnp.float32
    ).astype(jnp.bfloat16)                          # frozen encoder, half precision
    feats = feats.astype(jnp.float32)               # features.float()
    return jnp.dot(feats, w_cls) + b_cls[None, :]   # nn.Linear


if __name__ == "__main__":
    # Small shapes consistent with the module: CLIP-style 3-channel image,
    # visual.output_dim = 32, num_classes = 8.
    B, C, H, W = 2, 3, 16, 16
    output_dim, num_classes = 32, 8
    d_in = C * H * W

    key = jax.random.PRNGKey(0)
    k_img, k_enc, k_w, k_b = jax.random.split(key, 4)

    image = jax.random.normal(k_img, (B, C, H, W), dtype=jnp.float32).astype(
        jnp.bfloat16
    )
    # Synthetic frozen encoder weights (stand-in for clip_model.encode_image).
    w_enc = (
        jax.random.normal(k_enc, (d_in, output_dim), dtype=jnp.float32) * 0.02
    ).astype(jnp.bfloat16)
    # Classifier parameters: nn.Linear(output_dim, num_classes).
    w_cls = (
        jax.random.normal(k_w, (output_dim, num_classes), dtype=jnp.float32) * 0.1
    )
    b_cls = jnp.zeros((num_classes,), dtype=jnp.float32)

    logits = clip_classifier_forward(image, w_enc, w_cls, b_cls)
    logits = jax.block_until_ready(logits)

    ref = reference_forward(image, w_enc, w_cls, b_cls)
    assert logits.shape == (B, num_classes)
    assert logits.dtype == jnp.float32
    assert jnp.allclose(logits, ref, atol=1e-2, rtol=1e-2), (
        f"max abs err {jnp.max(jnp.abs(logits - ref))}"
    )
    print("KERNEL_OK")
</pallas_src>

<mosaic_0001>
module attributes {stable_mosaic.version = 11 : i64} {
  func.func @clip_classifier_kernel(%arg0: i32, %arg1: i32, %arg2: memref<16x512xbf16, #tpu.memory_space<vmem>>, %arg3: memref<512x128xbf16, #tpu.memory_space<vmem>>, %arg4: memref<128x128xf32, #tpu.memory_space<vmem>>, %arg5: memref<1x128xf32, #tpu.memory_space<vmem>>, %arg6: memref<16x128xf32, #tpu.memory_space<vmem>>, %arg7: memref<16x128xf32, #tpu.memory_space<vmem>>) attributes {dimension_semantics = [#tpu.dimension_semantics<parallel>, #tpu.dimension_semantics<arbitrary>], iteration_bounds = array<i64: 1, 2>, scalar_prefetch = 0 : i64, scratch_operands = 1 : i64, tpu.core_type = #tpu.core_type<tc>, window_params = [{transform_indices = @transform_0, window_bounds = array<i64: 16, 512>}, {transform_indices = @transform_1, window_bounds = array<i64: 512, 128>}, {pipeline_mode = #tpu.pipeline_mode<synchronous>, transform_indices = @transform_2, window_bounds = array<i64: 128, 128>}, {pipeline_mode = #tpu.pipeline_mode<synchronous>, transform_indices = @transform_3, window_bounds = array<i64: 1, 128>}, {transform_indices = @transform_4, window_bounds = array<i64: 16, 128>}]} {
    %c0_i32 = arith.constant 0 : i32
    %0 = arith.cmpi eq, %arg1, %c0_i32 : i32
    %1 = arith.extui %0 : i1 to i32
    %c0_i32_0 = arith.constant 0 : i32
    %2 = arith.cmpi ne, %1, %c0_i32_0 : i32
    scf.if %2 {
      %cst_9 = arith.constant 0.000000e+00 : f32
      %12 = vector.broadcast %cst_9 : f32 to vector<16x128xf32>
      %c0_10 = arith.constant 0 : index
      %c0_11 = arith.constant 0 : index
      %13 = vector.load %arg7[%c0_10, %c0_11] : memref<16x128xf32, #tpu.memory_space<vmem>>, vector<16x128xf32>
      tpu.vector_store %arg7[%c0_10, %c0_11], %12 {strides = array<i32>} : memref<16x128xf32, #tpu.memory_space<vmem>>, vector<16x128xf32>,
    } else {
    }
    %c0 = arith.constant 0 : index
    %c0_1 = arith.constant 0 : index
    %3 = vector.load %arg7[%c0, %c0_1] : memref<16x128xf32, #tpu.memory_space<vmem>>, vector<16x128xf32>
    %c0_2 = arith.constant 0 : index
    %c0_3 = arith.constant 0 : index
    %4 = vector.load %arg2[%c0_2, %c0_3] : memref<16x512xbf16, #tpu.memory_space<vmem>>, vector<16x512xbf16>
    %c0_4 = arith.constant 0 : index
    %c0_5 = arith.constant 0 : index
    %5 = vector.load %arg3[%c0_4, %c0_5] : memref<512x128xbf16, #tpu.memory_space<vmem>>, vector<512x128xbf16>
    %cst = arith.constant dense<0.000000e+00> : vector<16x128xf32>
    %6 = tpu.matmul %4, %5, %cst {dimension_numbers = #tpu.dot_dimension_numbers<[1], [0], [0], [1], [0, 0, 1, 1], [], []>} : vector<16x512xbf16>, vector<512x128xbf16>, vector<16x128xf32> -> vector<16x128xf32>
    %7 = arith.addf %3, %6 : vector<16x128xf32>
    %c0_6 = arith.constant 0 : index
    %c0_7 = arith.constant 0 : index
    %8 = vector.load %arg7[%c0_6, %c0_7] : memref<16x128xf32, #tpu.memory_space<vmem>>, vector<16x128xf32>
    tpu.vector_store %arg7[%c0_6, %c0_7], %7 {strides = array<i32>} : memref<16x128xf32, #tpu.memory_space<vmem>>, vector<16x128xf32>,
    %c1_i32 = arith.constant 1 : i32
    %9 = arith.cmpi eq, %arg1, %c1_i32 : i32
    %10 = arith.extui %9 : i1 to i32
    %c0_i32_8 = arith.constant 0 : i32
    %11 = arith.cmpi ne, %10, %c0_i32_8 : i32
    scf.if %11 {
      %c0_9 = arith.constant 0 : index
      %c0_10 = arith.constant 0 : index
      %12 = vector.load %arg7[%c0_9, %c0_10] : memref<16x128xf32, #tpu.memory_space<vmem>>, vector<16x128xf32>
      %13 = arith.truncf %12 : vector<16x128xf32> to vector<16x128xbf16>
      %14 = arith.extf %13 : vector<16x128xbf16> to vector<16x128xf32>
      %c0_11 = arith.constant 0 : index
      %c0_12 = arith.constant 0 : index
      %15 = vector.load %arg4[%c0_11, %c0_12] : memref<128x128xf32, #tpu.memory_space<vmem>>, vector<128x128xf32>
      %cst_13 = arith.constant dense<0.000000e+00> : vector<16x128xf32>
      %16 = tpu.matmul %14, %15, %cst_13 {dimension_numbers = #tpu.dot_dimension_numbers<[1], [0], [0], [1], [0, 0, 1, 1], [], []>} : vector<16x128xf32>, vector<128x128xf32>, vector<16x128xf32> -> vector<16x128xf32>
      %c0_14 = arith.constant 0 : index
      %c0_15 = arith.constant 0 : index
      %17 = vector.load %arg5[%c0_14, %c0_15] : memref<1x128xf32, #tpu.memory_space<vmem>>, vector<1x128xf32>
      %18 = vector.broadcast %17 : vector<1x128xf32> to vector<16x128xf32>
      %19 = arith.addf %16, %18 : vector<16x128xf32>
      %c0_16 = arith.constant 0 : index
      %c0_17 = arith.constant 0 : index
      %20 = vector.load %arg6[%c0_16, %c0_17] : memref<16x128xf32, #tpu.memory_space<vmem>>, vector<16x128xf32>
      tpu.vector_store %arg6[%c0_16, %c0_17], %19 {strides = array<i32>} : memref<16x128xf32, #tpu.memory_space<vmem>>, vector<16x128xf32>,
    } else {
    }
    return
  }
  func.func @transform_0(%arg0: i32, %arg1: i32) -> (i32, i32) {
    %c0_i32 = arith.constant 0 : i32
    return %arg0, %arg1 : i32, i32
  }
  func.func @transform_1(%arg0: i32, %arg1: i32) -> (i32, i32) {
    %c0_i32 = arith.constant 0 : i32
    %c0_i32_0 = arith.constant 0 : i32
    return %arg1, %c0_i32 : i32, i32
  }
  func.func @transform_2(%arg0: i32, %arg1: i32) -> (i32, i32) {
    %c0_i32 = arith.constant 0 : i32
    %c0_i32_0 = arith.constant 0 : i32
    %c0_i32_1 = arith.constant 0 : i32
    return %c0_i32, %c0_i32_0 : i32, i32
  }
  func.func @transform_3(%arg0: i32, %arg1: i32) -> (i32, i32) {
    %c0_i32 = arith.constant 0 : i32
    %c0_i32_0 = arith.constant 0 : i32
    %c0_i32_1 = arith.constant 0 : i32
    return %c0_i32, %c0_i32_0 : i32, i32
  }
  func.func @transform_4(%arg0: i32, %arg1: i32) -> (i32, i32) {
    %c0_i32 = arith.constant 0 : i32
    %c0_i32_0 = arith.constant 0 : i32
    return %arg0, %c0_i32 : i32, i32
  }
}

</mosaic_0001>

<bundles_post_ra>
// kernel: tpu_custom_call.1
= control target key start
LH: loop header
LB: loop body
LE: loop exit
PB: predicated region body
PF: predicated region fallthrough
CT: control target
= control target key end

     0   :  { %s1675_s0 = inlined_call_operand.hbm [shape: bf16[16,1024], index: 0, kind: input, shape index: {}]   ;;  %s1676_s1 = inlined_call_operand.hbm [shape: bf16[1024,128], index: 1, kind: input, shape index: {}]   ;;  %s1677_s2 = inlined_call_operand.hbm [shape: f32[128,128], index: 2, kind: input, shape index: {}]   ;;  %s1678_s3 = inlined_call_operand.vmem [shape: f32[1,128], index: 3, kind: input, shape index: {}]   ;;  %s1679_s4 = inlined_call_operand.hbm [shape: f32[16,128], index: 4, kind: output, shape index: {}]  }
   0x1   :  { %1684 = sst [smem:[#allocation14_spill]] %s1675_s0 }
   0x2   :  { %1685 = sst [smem:[#allocation15_spill]] %s1677_s2 }
   0x3   :  { %9 = vsyncpa [#allocation4], 0 }
   0x4   :  { %11 = vsyncpa [#allocation4 + $0x1], 0 }
   0x5   :  { %12 = vsyncpa [#allocation7], 0 }
   0x6   :  { %14 = vsyncpa [#allocation7 + $0x1], 0 }
   0x7   :  { %15 = vsyncpa [#allocation5], 0  ;;  %s1407_s15 = smov 0   ;;  %s1409_s16 = smov 0  }
   0x8   :  { %s1411_s17 = smov 0   ;;  %s1413_s18 = smov 0  }
   0x9   :  { %s1415_s19 = smov 0   ;;  %s1417_s20 = smov 0  }
   0xa LB: > { %s1436_s21 = sadd.s32 4294967295, %s1366_s20   ;;  %s42_s22 = sadd.s32 1, %s1354_s17  ;;  %s1366_s20 = sphi %s1417_s20, %s21_s20   ;;  %s1362_s19 = sphi %s1415_s19, %s1701_s19   ;;  %s1358_s18 = sphi %s1413_s18, %s1700_s18   ;;  %s1354_s17 = sphi %s1411_s17, %s1699_s17   ;;  %s1350_s16 = sphi %s1409_s16, %s1698_s16   ;;  %s1346_s15 = sphi %s1407_s15, %s1697_s15  }
   0xb   : > { %p49_p0 = scmp.ne.s32.totalorder %s1354_s17, %s1350_s16  ;;  %p50_p1 = scmp.eq.s32.totalorder %s1366_s20, 0 }
   0xc   : > { %p55_p2 = scmp.ne.s32.totalorder %s1350_s16, %s1346_s15  ;;  %p1680_p3 = scmp.eq.s32.totalorder %s1436_s21, 0 }
   0xd   : > { %p51_p4 = por %p50_p1, %p49_p0  ;;  %p877_p5 = scmp.ge.s32.totalorder %s1366_s20, 1 }
   0xe   : > { %p1447_p6 = por %p1680_p3, %p55_p2  ;;  %p160_p7 = scmp.lt.s32.totalorder %s1366_s20, 3 }
   0xf   : > { %s1368_s25 = smov [#allocation8]   ;;  %p1088_p10 = scmp.lt.s32.totalorder %s1366_s20, 2 }
  0x10   : > { %s1686_s23 = scalar_select %p1447_p6, 1, 0 }
  0x11   : > { %p1452_p8 = pnand %p877_p5, %p160_p7  ;;  %s172_s26 = sshll.u32 %s1368_s25, 4  ;;  %s173_s26 = int_to_ptr.vmem [resolvable:$true] %s172_s26 }
  0x12   : > { %p1465_p12 = pnand %p1088_p10, %p51_p4  ;;  %s30_s29 = sadd.s32 1, %s1362_s19 }
  0x13   : > { %s1687_s24 = scalar_select %p1452_p8, 1, 0 }
  0x14   : > { %p1076_p9 = pneg %p1452_p8  ;;  %s1690_s2 = sld [smem:[#allocation15_spill]] }
  0x15   : > { %s1689_s28 = scalar_select %p1465_p12, 1, 0 }
  0x16   : > { %p1461_p11 = pnand %p1076_p9, %p1680_p3 }
  0x18   : > { %p1192_p0 = pneg %p1461_p11 }
  0x1a   : > { %s1190_s6 = scalar_lea.hbm %s1690_s2, 2048 }
  0x1b   : > { %p1191_p13 = scmp.ne.s32.totalorder %s1690_s2, %s1190_s6  ;;  %p1197_p4 = scmp.lt.u32.totalorder %s1190_s6, %s1690_s2 }
  0x1d   : > { %p1193_p1 = pnand %p1192_p0, %p1191_p13 }
  0x1f   : > { %p1194_p2 = pneg %p1193_p1 }
  0x21   : > { %p1199_p5 = pnand %p1197_p4, %p1194_p2 }
  0x23   : > { %1202 = shalt.err (!%p1199_p5)
}
  0x24   : > { %s1203_s11 = scalar_lea.vmem %s173_s26, 2048  ;;  %p1211_p3 = scmp.lt.s32.totalorder %s173_s26, %s173_s26 }
  0x25   : > { %p1204_p7 = scmp.ne.s32.totalorder %s173_s26, %s1203_s11  ;;  %p1212_p6 = scmp.lt.s32.totalorder %s1203_s11, %s1203_s11 }
  0x27   : > { %p1206_p9 = pnand %p1204_p7, %p1192_p0  ;;  %p1213_p8 = por %p1212_p6, %p1211_p3 }
  0x29   : > { %p1207_p10 = pneg %p1206_p9 }
  0x2b   : > { %p1214_p12 = pnand %p1213_p8, %p1207_p10 }
  0x2d   : > { %1217 = shalt.err (!%p1214_p12)
}
  0x2e   : > { %s1369_s12 = smov 128   ;;  %s1370_s13 = smov 8  }
  0x2f   : > { %1079 = dma.hbm_to_vmem [thread:$0]  (!%p1461_p11), %s1690_s2, 2048, %s173_s26, [#allocation7], %s1369_s12, %s1369_s12, %s1370_s13  }
  0x30   : > { %p31_p13 = scmp.ge.s32.totalorder %s30_s29, 2  ;;  %s1487_s25 = sand.u32 1, %s1354_s17  }
  0x31   : > { %s933_s30 = sshll.u32 %s1362_s19, 8  ;;  %s880_s5 = sshll.u32 %s1487_s25, 5 }
  0x32   : > { %s1703_s29 = smov (%p31_p13, %s30_s29), 0  ;;  %s1691_s0 = sld [smem:[#allocation14_spill]] }
  0x33   : > { %s38_s6 = ssub.s32 %s1362_s19, %s1703_s29  ;;  %s193_s26 = scalar_lea.vmem [#allocation3], %s880_s5 }
  0x34   : > { %p40_p3 = scmp.eq.s32.totalorder %s38_s6, 0  ;;  %s203_s9 = sshll.u32 %s193_s26, 4  ;;  %s1505_s9 = int_to_ptr.vmem [resolvable:$true] %s203_s9 }
  0x35   : > { %s213_s11 = sand.u32 1, %s1366_s20   ;;  %s190_s12 = scalar_lea.sflag [#allocation4], %s1487_s25 }
  0x36   : > { %s1503_s10 = scalar_select %p40_p3, %s1354_s17, %s42_s22  }
  0x37   : > { %p1692_p8 = scmp.ne.s32.totalorder %s1689_s28, 0 }
  0x38   : > { %s1498_s8 = scalar_lea.hbm %s1691_s0, %s933_s30  ;;  %s1223_s30 = scalar_lea.hbm %s1691_s0, 1024 }
  0x39   : > { %s1218_s13 = scalar_lea.hbm %s1498_s8, 512  ;;  %p1220_p11 = pneg %p1692_p8 }
  0x3a   : > { %p1219_p6 = scmp.ne.s32.totalorder %s1498_s8, %s1218_s13  ;;  %p1224_p1 = scmp.lt.u32.totalorder %s1498_s8, %s1691_s0 }
  0x3b   : > { %p1225_p2 = scmp.lt.u32.totalorder %s1223_s30, %s1218_s13  ;;  %p1227_p5 = scmp.lt.u32.totalorder %s1218_s13, %s1498_s8 }
  0x3c   : > { %p1221_p12 = pnand %p1220_p11, %p1219_p6 }
  0x3d   : > { %p1226_p4 = por %p1225_p2, %p1224_p1 }
  0x3e   : > { %p1222_p0 = pneg %p1221_p12 }
  0x3f   : > { %p1228_p7 = por %p1227_p5, %p1226_p4 }
  0x41   : > { %p1229_p9 = pnand %p1228_p7, %p1222_p0 }
  0x43   : > { %1232 = shalt.err (!%p1229_p9)
}
  0x44   : > { %s1233_s22 = scalar_lea.vmem %s1505_s9, 512  ;;  %s1371_s7 = smov [#allocation3]  }
  0x45   : > { %p1234_p10 = scmp.ne.s32.totalorder %s1505_s9, %s1233_s22  ;;  %s1238_s27 = sshll.u32 %s1371_s7, 4  ;;  %s1239_s27 = int_to_ptr.vmem [resolvable:$false] %s1238_s27 }
  0x46   : > { %s1240_s26 = scalar_lea.vmem %s1239_s27, 1024  ;;  %p1241_p6 = scmp.lt.s32.totalorder %s1505_s9, %s1239_s27 }
  0x47   : > { %p1236_p13 = pnand %p1234_p10, %p1220_p11  ;;  %p1242_p12 = scmp.lt.s32.totalorder %s1240_s26, %s1233_s22 }
  0x49   : > { %p1237_p3 = pneg %p1236_p13  ;;  %p1243_p1 = por %p1242_p12, %p1241_p6 }
  0x4b   : > { %p1244_p2 = pnand %p1243_p1, %p1237_p3 }
  0x4d   : > { %1247 = shalt.err (!%p1244_p2)
}
  0x4e   : > { %s1372_s13 = smov 512   ;;  %s1373_s14 = smov 256  }
  0x4f   : > { %s1374_s15 = smov 16   ;;  %s883_s30 = sshll.u32 %s1487_s25, 8 }
  0x50   : > { %1083 = dma.hbm_to_vmem [thread:$0]  (!%p1692_p8), %s1498_s8, 512, %s1505_s9, %s190_s12, %s1372_s13, %s1373_s14, %s1374_s15  }
  0x51   : > { %s934_s5 = sshll.u32 %s1362_s19, 12  ;;  %s217_s27 = scalar_lea.vmem [#allocation6], %s883_s30 }
  0x52   : > { %s1541_s7 = scalar_lea.hbm %s1676_s1, %s934_s5  ;;  %s224_s26 = sshll.u32 %s217_s27, 4  ;;  %s1543_s26 = int_to_ptr.vmem [resolvable:$true] %s224_s26 }
  0x53   : > { %s1547_s0 = scalar_lea.sflag [#allocation7], %s213_s11  ;;  %s1248_s2 = scalar_lea.hbm %s1541_s7, 4096 }
  0x54   : > { %p1249_p0 = scmp.ne.s32.totalorder %s1541_s7, %s1248_s2  ;;  %s1253_s9 = scalar_lea.hbm %s1676_s1, 8192 }
  0x55   : > { %p1254_p7 = scmp.lt.u32.totalorder %s1541_s7, %s1676_s1  ;;  %p1255_p9 = scmp.lt.u32.totalorder %s1253_s9, %s1248_s2 }
  0x56   : > { %p1251_p4 = pnand %p1249_p0, %p1220_p11  ;;  %p1257_p13 = scmp.lt.u32.totalorder %s1248_s2, %s1541_s7 }
  0x57   : > { %p1256_p10 = por %p1255_p9, %p1254_p7 }
  0x58   : > { %p1252_p5 = pneg %p1251_p4 }
  0x59   : > { %p1258_p3 = por %p1257_p13, %p1256_p10 }
  0x5b   : > { %p1259_p6 = pnand %p1258_p3, %p1252_p5 }
  0x5d   : > { %1262 = shalt.err (!%p1259_p6)
}
  0x5e   : > { %s1263_s11 = scalar_lea.vmem %s1543_s26, 4096  ;;  %s1375_s14 = smov [#allocation6]  }
  0x5f   : > { %p1264_p12 = scmp.ne.s32.totalorder %s1543_s26, %s1263_s11  ;;  %s1268_s15 = sshll.u32 %s1375_s14, 4  ;;  %s1269_s15 = int_to_ptr.vmem [resolvable:$false] %s1268_s15 }
  0x60   : > { %s1270_s30 = scalar_lea.vmem %s1269_s15, 8192  ;;  %p1271_p0 = scmp.lt.s32.totalorder %s1543_s26, %s1269_s15 }
  0x61   : > { %p1266_p1 = pnand %p1264_p12, %p1220_p11  ;;  %p1272_p4 = scmp.lt.s32.totalorder %s1270_s30, %s1263_s11 }
  0x63   : > { %p1267_p2 = pneg %p1266_p1  ;;  %p1273_p7 = por %p1272_p4, %p1271_p0 }
  0x65   : > { %p1274_p9 = pnand %p1273_p7, %p1267_p2 }
  0x67   : > { %1277 = shalt.err (!%p1274_p9)
}
  0x68   : > { %s1376_s2 = smov 64   ;;  %s1377_s5 = smov 4  }
  0x69   : > { %1086 = dma.hbm_to_vmem [thread:$0]  (!%p1692_p8), %s1541_s7, 4096, %s1543_s26, %s1547_s0, %s1376_s2, %s1376_s2, %s1377_s5  }
  0x6a   : > { %p1693_p11 = scmp.ne.s32.totalorder %s1687_s24, 0 }
  0x6b   : > { %s238_s6 = sand.u32 (!%p1693_p11), 1, %s1350_s16   ;;  %p1694_p5 = scmp.ne.s32.totalorder (!%p1693_p11), %s1686_s23, 0 }
  0x6c   : > { %236 = sbr.rel (%p1693_p11) target bundleno = 637 (0x27d), region = 36  ;;  %s887_s22 = sshll.u32 (!%p1693_p11), %s238_s6, 5 }
  0x6d   : > { %s239_s27 = scalar_lea.sflag (!%p1693_p11), [#allocation4], %s238_s6  ;;  %s1576_s25 = scalar_lea.vmem (!%p1693_p11), [#allocation3], %s887_s22 }
  0x73   : > { %1329 = dma.done.wait (%p1694_p5), %s239_s27, 512  }
  0x74   : > { %1331 = vsyncadd (%p1694_p5), %s239_s27, 4294966784  ;;  %s247_s8 = sand.u32 1, %s1436_s21   ;;  %s888_s28 = sshll.u32 %s238_s6, 8 }
  0x75   : > { %s248_s0 = scalar_lea.sflag [#allocation7], %s247_s8  ;;  %s1583_s7 = scalar_lea.vmem [#allocation6], %s888_s28 }
  0x76   : > { %1333 = dma.done.wait (%p1694_p5), %s248_s0, 4096  }
  0x77   : > { %1335 = vsyncadd (%p1694_p5), %s248_s0, 4294963200  ;;  %p1695_p8 = scmp.eq.s32.totalorder %s1436_s21, 0 }
  0x79   : > { %1337 = dma.done.wait (%p1695_p8), [#allocation7], 2048   ;;  %p1696_p10 = pmov %p1695_p8 }
  0x7a   : > { %p890_p13 = scmp.ne.s32.totalorder %s1358_s18, 0 }
  0x7b   : > { %1339 = vsyncadd (%p1696_p10), [#allocation7], 4294965248  ;;  %v1378_v0 = vmov (!%p890_p13), 0.0  }
  0x7c   : > { %288 = sbr.rel (%p890_p13) target bundleno = 131 (0x83), region = 52  ;;  %289 = vst [vmem:[#allocation2] sm:$0xff] (!%p890_p13), %v1378_v0  ;;  %290 = vst [vmem:[#allocation2 + $0x8] sm:$0xff] (!%p890_p13), %v1378_v0 }
  0x83 PF: > { %v1152_v1 = vld [vmem:[%s1583_s7 + $0x40] sm:$0xff]   ;;  %v1156_v5 = vld [vmem:[%s1583_s7 + $0x48] sm:$0xff]   ;;  %v1160_v9 = vld [vmem:[%s1583_s7 + $0x50] sm:$0xff]   ;;  %p927_p3 = scmp.ne.s32.totalorder %s1358_s18, 1 }
  0x84   : > { %v1153_v2 = vld [vmem:[%s1583_s7 + $0xc0] sm:$0xff]   ;;  %935 = vmatprep.subr.bf16.mxu0 %v1152_v1  ;;  %v1157_v6 = vld [vmem:[%s1583_s7 + $0xc8] sm:$0xff]   ;;  %v1161_v10 = vld [vmem:[%s1583_s7 + $0xd0] sm:$0xff]  }
  0x85   : > { %v1154_v3 = vld [vmem:[%s1583_s7] sm:$0xff]   ;;  %957 = vmatprep.subr.bf16.mxu1 %v1153_v2  ;;  %v1158_v7 = vld [vmem:[%s1583_s7 + $0x8] sm:$0xff]   ;;  %v1162_v11 = vld [vmem:[%s1583_s7 + $0x10] sm:$0xff]  }
  0x86   : > { %v1155_v4 = vld [vmem:[%s1583_s7 + $0x80] sm:$0xff]   ;;  %936 = vmatpush3.bf16.msra.mxu0 %v1154_v3  ;;  %v1159_v8 = vld [vmem:[%s1583_s7 + $0x88] sm:$0xff]   ;;  %v1163_v12 = vld [vmem:[%s1583_s7 + $0x90] sm:$0xff]  }
  0x87   : > { %958 = vmatpush3.bf16.msra.mxu1 %v1155_v4  ;;  %937 = vmatprep.subr.bf16.mxu0 %v1156_v5  ;;  %v1164_v13 = vld [vmem:[%s1583_s7 + $0x58] sm:$0xff]   ;;  %v1168_v17 = vld [vmem:[%s1583_s7 + $0x60] sm:$0xff]   ;;  %v1172_v21 = vld [vmem:[%s1583_s7 + $0x68] sm:$0xff]  }
  0x88   : > { %959 = vmatprep.subr.bf16.mxu1 %v1157_v6  ;;  %v1165_v14 = vld [vmem:[%s1583_s7 + $0xd8] sm:$0xff]   ;;  %v1169_v18 = vld [vmem:[%s1583_s7 + $0xe0] sm:$0xff]   ;;  %v1173_v22 = vld [vmem:[%s1583_s7 + $0xe8] sm:$0xff]  }
  0x89   : > { %v1166_v15 = vld [vmem:[%s1583_s7 + $0x18] sm:$0xff]   ;;  %v1170_v19 = vld [vmem:[%s1583_s7 + $0x20] sm:$0xff]   ;;  %v1174_v23 = vld [vmem:[%s1583_s7 + $0x28] sm:$0xff]  }
  0x8a   : > { %938 = vmatpush3.bf16.msra.mxu0 %v1158_v7  ;;  %v1167_v16 = vld [vmem:[%s1583_s7 + $0x98] sm:$0xff]   ;;  %v1171_v20 = vld [vmem:[%s1583_s7 + $0xa0] sm:$0xff]   ;;  %v1175_v24 = vld [vmem:[%s1583_s7 + $0xa8] sm:$0xff]  }
  0x8b   : > { %960 = vmatpush3.bf16.msra.mxu1 %v1159_v8  ;;  %939 = vmatprep.subr.bf16.mxu0 %v1160_v9  ;;  %v1176_v25 = vld [vmem:[%s1583_s7 + $0x70] sm:$0xff]   ;;  %v1180_v29 = vld [vmem:[%s1583_s7 + $0x78] sm:$0xff]   ;;  %v668_v55 = vld [vmem:[#allocation8] sm:$0xff] (!%p927_p3) }
  0x8c   : > { %961 = vmatprep.subr.bf16.mxu1 %v1161_v10  ;;  %v1177_v26 = vld [vmem:[%s1583_s7 + $0xf0] sm:$0xff]   ;;  %v1181_v30 = vld [vmem:[%s1583_s7 + $0xf8] sm:$0xff]   ;;  %v669_v56 = vld [vmem:[#allocation8 + $0x8] sm:$0xff] (!%p927_p3) }
  0x8d   : > { %v1178_v27 = vld [vmem:[%s1583_s7 + $0x30] sm:$0xff]   ;;  %v1182_v31 = vld [vmem:[%s1583_s7 + $0x38] sm:$0xff]   ;;  %v1032_v58 = vpack.c.bf16 (!%p927_p3), %v669_v56, %v668_v55  ;;  %v672_v61 = vld [vmem:[#allocation8 + $0x20] sm:$0xff] (!%p927_p3) }
  0x8e   : > { %940 = vmatpush3.bf16.msra.mxu0 %v1162_v11  ;;  %v1179_v28 = vld [vmem:[%s1583_s7 + $0xb0] sm:$0xff]   ;;  %v1183_v32 = vld [vmem:[%s1583_s7 + $0xb8] sm:$0xff]   ;;  %v673_v62 = vld [vmem:[#allocation8 + $0x28] sm:$0xff] (!%p927_p3) }
  0x8f   : > { %962 = vmatpush3.bf16.msra.mxu1 %v1163_v12  ;;  %941 = vmatprep.subr.bf16.mxu0 %v1164_v13  ;;  %v1184_v33 = vld [vmem:[%s1576_s25] ss:$16 sps:$4 sm:$0xff]   ;;  %v1186_v34 = vld [vmem:[%s1576_s25 + $0x4] ss:$16 sps:$4 sm:$0xff]   ;;  %v1187_v35 = vld [vmem:[%s1576_s25 + $0x8] ss:$16 sps:$4 sm:$0xff]   ;;  %v1040_v63 = vpack.c.bf16 (!%p927_p3), %v673_v62, %v672_v61 }
  0x90   : > { %963 = vmatprep.subr.bf16.mxu1 %v1165_v14  ;;  %v1189_v36 = vld [vmem:[%s1576_s25 + $0xc] ss:$16 sps:$4 sm:$0xff]   ;;  %605 = vmatprep.mubr.bf16.mxu0 %v1186_v34  ;;  %v291_v46 = vld [vmem:[#allocation2] sm:$0xff]  ;;  %v676_v4 = vld [vmem:[#allocation8 + $0x40] sm:$0xff] (!%p927_p3) }
  0x91   : > { %646 = vmatprep.mubr.bf16.mxu1 %v1189_v36  ;;  %v292_v51 = vld [vmem:[#allocation2 + $0x8] sm:$0xff]  ;;  %v670_v57 = vld [vmem:[#allocation8 + $0x10] sm:$0xff] (!%p927_p3)  ;;  %v677_v5 = vld [vmem:[#allocation8 + $0x48] sm:$0xff] (!%p927_p3) }
  0x92   : > { %942 = vmatpush3.bf16.msra.mxu0 %v1166_v15  ;;  %v671_v59 = vld [vmem:[#allocation8 + $0x18] sm:$0xff] (!%p927_p3)  ;;  %v674_v1 = vld [vmem:[#allocation8 + $0x30] sm:$0xff] (!%p927_p3)  ;;  %v1048_v6 = vpack.c.bf16 (!%p927_p3), %v677_v5, %v676_v4  ;;  %v680_v10 = vld [vmem:[#allocation8 + $0x60] sm:$0xff] (!%p927_p3) }
  0x93   : > { %964 = vmatpush3.bf16.msra.mxu1 %v1167_v16  ;;  %943 = vmatprep.subr.bf16.mxu0 %v1168_v17  ;;  %v1036_v60 = vpack.c.bf16 (!%p927_p3), %v671_v59, %v670_v57  ;;  %v675_v2 = vld [vmem:[#allocation8 + $0x38] sm:$0xff] (!%p927_p3)  ;;  %v678_v7 = vld [vmem:[#allocation8 + $0x50] sm:$0xff] (!%p927_p3)  ;;  %v681_v11 = vld [vmem:[#allocation8 + $0x68] sm:$0xff] (!%p927_p3) }
  0x94   : > { %965 = vmatprep.subr.bf16.mxu1 %v1169_v18  ;;  %v1044_v3 = vpack.c.bf16 (!%p927_p3), %v675_v2, %v674_v1  ;;  %v679_v8 = vld [vmem:[#allocation8 + $0x58] sm:$0xff] (!%p927_p3)  ;;  %v1056_v12 = vpack.c.bf16 (!%p927_p3), %v681_v11, %v680_v10  ;;  %v682_v13 = vld [vmem:[#allocation8 + $0x70] sm:$0xff] (!%p927_p3) }
  0x95   : > { %v1052_v9 = vpack.c.bf16 (!%p927_p3), %v679_v8, %v678_v7  ;;  %v683_v14 = vld [vmem:[#allocation8 + $0x78] sm:$0xff] (!%p927_p3)  ;;  %v928_v17 = vld [vmem:[%s1678_s3] ss:$0 sm:$0xff] (!%p927_p3) }
  0x96   : > { %944 = vmatpush3.bf16.msra.mxu0 %v1170_v19  ;;  %v1060_v15 = vpack.c.bf16 (!%p927_p3), %v683_v14, %v682_v13 }
  0x97   : > { %966 = vmatpush3.bf16.msra.mxu1 %v1171_v20  ;;  %945 = vmatprep.subr.bf16.mxu0 %v1172_v21 }
  0x98   : > { %967 = vmatprep.subr.bf16.mxu1 %v1173_v22 }
  0x9a   : > { %946 = vmatpush3.bf16.msra.mxu0 %v1174_v23 }
  0x9b   : > { %968 = vmatpush3.bf16.msra.mxu1 %v1175_v24  ;;  %947 = vmatprep.subr.bf16.mxu0 %v1176_v25 }
  0x9c   : > { %969 = vmatprep.subr.bf16.mxu1 %v1177_v26 }
  0x9e   : > { %948 = vmatpush3.bf16.msra.mxu0 %v1178_v27 }
  0x9f   : > { %970 = vmatpush3.bf16.msra.mxu1 %v1179_v28  ;;  %949 = vmatprep.subr.bf16.mxu0 %v1180_v29 }
  0xa0   : > { %971 = vmatprep.subr.bf16.mxu1 %v1181_v30 }
  0xa2   : > { %950 = vmatpush3.bf16.msra.mxu0 %v1182_v31 }
  0xa3   : > { %972 = vmatpush3.bf16.msra.mxu1 %v1183_v32  ;;  %1033 = vmatprep.subr.bf16.mxu0 (!%p927_p3), %v1032_v58 }
  0xa5   : > { %606 = vmatmul.mubr.bf16.vlgmr.msra.gmra.mrb[0].mxu0 %v1184_v33 }
  0xa6   : > { %647 = vmatmul.mubr.bf16.vlgmr.msra.gmra.mrb[0].mxu1 %v1187_v35  ;;  %1035 = vmatpush3.bf16.msra.mxu0 (!%p927_p3), %v1032_v58 }
  0xa7   : > { %1037 = vmatprep.subr.bf16.mxu0 (!%p927_p3), %v1036_v60 }
  0xaa   : > { %1039 = vmatpush3.bf16.msra.mxu0 (!%p927_p3), %v1036_v60 }
  0xab   : > { %1041 = vmatprep.subr.bf16.mxu0 (!%p927_p3), %v1040_v63 }
  0xae   : > { %1043 = vmatpush3.bf16.msra.mxu0 (!%p927_p3), %v1040_v63 }
  0xaf   : > { %1045 = vmatprep.subr.bf16.mxu0 (!%p927_p3), %v1044_v3 }
  0xb2   : > { %1047 = vmatpush3.bf16.msra.mxu0 (!%p927_p3), %v1044_v3 }
  0xb3   : > { %1049 = vmatprep.subr.bf16.mxu0 (!%p927_p3), %v1048_v6 }
  0xb6   : > { %1051 = vmatpush3.bf16.msra.mxu0 (!%p927_p3), %v1048_v6 }
  0xb7   : > { %1053 = vmatprep.subr.bf16.mxu0 (!%p927_p3), %v1052_v9 }
  0xba   : > { %1055 = vmatpush3.bf16.msra.mxu0 (!%p927_p3), %v1052_v9 }
  0xbb   : > { %1057 = vmatprep.subr.bf16.mxu0 (!%p927_p3), %v1056_v12 }
  0xbe   : > { %1059 = vmatpush3.bf16.msra.mxu0 (!%p927_p3), %v1056_v12 }
  0xbf   : > { %1061 = vmatprep.subr.bf16.mxu0 (!%p927_p3), %v1060_v15 }
  0xc2   : > { %1063 = vmatpush3.bf16.msra.mxu0 (!%p927_p3), %v1060_v15 }
 0x178   : > { %v951_v37 = vpop.f32.mrb[0].mxu0 }
 0x179   : > { %v973_v38 = vpop.f32.mrb[0].mxu1  ;;  %v952_v39 = vpop.f32.mrb[1].mxu0 }
 0x17a   : > { %v953_v40 = vadd.f32 %v952_v39, %v951_v37  ;;  %v974_v41 = vpop.f32.mrb[1].mxu1  ;;  %v954_v42 = vpop.f32.mrb[2].mxu0 }
 0x17b   : > { %v975_v43 = vadd.f32 %v974_v41, %v973_v38  ;;  %v976_v44 = vpop.f32.mrb[2].mxu1  ;;  %v955_v45 = vpop.f32.mrb[3].mxu0 }
 0x17c   : > { %v956_v47 = vadd.f32 %v955_v45, %v954_v42  ;;  %v977_v48 = vpop.f32.mrb[3].mxu1 }
 0x17d   : > { %v649_v49 = vadd.f32 %v975_v43, %v953_v40  ;;  %v978_v50 = vadd.f32 %v977_v48, %v976_v44  ;;  %662 = sbr.rel (%p927_p3) target bundleno = 611 (0x263), region = 56 }
 0x17f   : > { %v655_v52 = vadd.f32 %v649_v49, %v291_v46  ;;  %v652_v53 = vadd.f32 %v978_v50, %v956_v47 }
 0x181   : > { %657 = vst [vmem:[#allocation2] sm:$0xff] %v655_v52  ;;  %v656_v54 = vadd.f32 %v652_v53, %v292_v51 }
 0x183   : > { %658 = vst [vmem:[#allocation2 + $0x8] sm:$0xff] %v656_v54 }
 0x188   : > { %v663_v0 = vld [vmem:[#allocation2] sm:$0xff] }
 0x189   : > { %1029 = vmatprep.mubr.f32.mxu0 %v663_v0 }
 0x18a   : > { %v664_v16 = vld [vmem:[#allocation2 + $0x8] sm:$0xff] }
 0x18b   : > { %1030 = vmatmul.mubr.f32.vlgmr.msra.gmra.mrb[0].mxu0 %v664_v16 }
 0x25e   : > { %v1031_v18 = vpop.f32.mrb[0].mxu0 }
 0x25f   : > { %v763_v19 = vadd.f32 %v1031_v18, %v928_v17  ;;  %v757_v20 = vpop.f32.mrb[1].mxu0 }
 0x260   : > { %v758_v21 = vadd.f32 %v928_v17, %v757_v20 }
 0x261   : > { %767 = vst [vmem:[#allocation9 + $0x8] sm:$0xff] %v763_v19 }
 0x262   : > { %766 = vst [vmem:[#allocation9] sm:$0xff] %v758_v21 }
 0x263 PF: > { %p1090_p6 = scmp.eq.s32.totalorder %s1436_s21, 1  ;;  %s1379_s24 = smov [#allocation9]  }
 0x264   : > { %s777_s26 = sshll.u32 %s1379_s24, 4  ;;  %s778_s26 = int_to_ptr.vmem [resolvable:$true] %s777_s26 }
 0x265   : > { %s1278_s9 = scalar_lea.vmem %s778_s26, 256  ;;  %p1285_p0 = scmp.lt.s32.totalorder %s778_s26, %s778_s26 }
 0x266   : > { %p1279_p12 = scmp.ne.s32.totalorder %s778_s26, %s1278_s9  ;;  %p1286_p4 = scmp.lt.s32.totalorder %s1278_s9, %s1278_s9 }
 0x268   : > { %p1280_p1 = pnand %p1279_p12, %p1090_p6  ;;  %p1287_p7 = por %p1286_p4, %p1285_p0 }
 0x26a   : > { %p1281_p2 = pneg %p1280_p1 }
 0x26c   : > { %p1288_p9 = pnand %p1287_p7, %p1281_p2 }
 0x26e   : > { %1291 = shalt.err (!%p1288_p9)
}
 0x26f   : > { %s1292_s11 = scalar_lea.hbm %s1679_s4, 256 }
 0x270   : > { %p1293_p11 = scmp.ne.s32.totalorder %s1679_s4, %s1292_s11  ;;  %p1298_p10 = scmp.lt.u32.totalorder %s1292_s11, %s1679_s4 }
 0x272   : > { %p1294_p5 = pnand %p1293_p11, %p1090_p6 }
 0x274   : > { %p1295_p8 = pneg %p1294_p5 }
 0x276   : > { %p1300_p13 = pnand %p1298_p10, %p1295_p8 }
 0x278   : > { %1303 = shalt.err (!%p1300_p13)
}
 0x279   : > { %s1380_s5 = smov 128   ;;  %s1381_s6 = smov 8  }
 0x27a   : > { %1073 = dma.vmem_to_hbm [thread:$0]  (%p1090_p6), %s778_s26, 256, %s1679_s4, [#allocation5], %s1380_s5, %s1380_s5, %s1381_s6  }
 0x27b   : > { %1341 = dma.done.wait (%p1090_p6), [#allocation5], 256  }
 0x27c   : > { %1343 = vsyncadd (%p1090_p6), [#allocation5], 4294967040 }
 0x27d PF: > { %s21_s20 = sadd.s32 1, %s1366_s20   ;;  %s1697_s15 = smov %s1350_s16 }
 0x27e   : > { %p18_p3 = scmp.ge.s32.totalorder %s21_s20, 4   ;;  %s1698_s16 = smov %s1354_s17 }
 0x27f   : > { %s1699_s17 = smov %s1503_s10  ;;  %s1700_s18 = smov %s1362_s19 }
 0x280   : > { %s1701_s19 = smov %s1703_s29  ;;  %20 = sbr.rel (!%p18_p3) target bundleno = 10 (0xa), region = 99 }
 0x287   :  { %793 = vsyncpa [#allocation4], 1 }
 0x288   :  { %795 = vsyncpa [#allocation4 + $0x1], 1 }
 0x289   :  { %796 = vsyncpa [#allocation7], 1 }
 0x28a   :  { %798 = vsyncpa [#allocation7 + $0x1], 1 }
 0x28b   :  { %799 = vsyncpa [#allocation5], 1 }
 0x28c   :  { %801 = vsyncpa [#allocation5 + $0x1], 1 }

</bundles_post_ra>
